<compile_context>
chip_gen: v7x
topology: tpu7x:2x2x1
jax: 0.10.0
libtpu: 0.0.40
codegen_flags: <defaults>
</compile_context>

<pallas_src>
import functools

import jax
import jax.numpy as jnp
from jax.experimental import pallas as pl
from jax.experimental.pallas import tpu as pltpu

INPUT_SIZE = 2
HIDDEN_SIZE = 64
OUTPUT_SIZE = 1


def _round_up(n, m):
    return ((n + m - 1) // m) * m


def _mlp_kernel(xT_ref, w1_ref, b1_ref, w2_ref, b2_ref, w3_ref, b3_ref, o_ref):
    xT = xT_ref[...]                                            # [2, TB] f32

    # fc1 (K=2): VPU broadcast FMAs; w1 is PyTorch-layout [64, 2], b1 is [64, 1].
    h1 = (w1_ref[:, 0:1] * xT[0:1, :]
          + w1_ref[:, 1:2] * xT[1:2, :]
          + b1_ref[...])                                        # [64, TB]
    h1 = jnp.maximum(h1, 0.0)

    # fc2: the one real MXU matmul, pure f32 ([64(out),64(in)] @ [64,TB]).
    h2 = jnp.dot(w2_ref[...], h1,
                 preferred_element_type=jnp.float32) + b2_ref[...]
    h2 = jnp.maximum(h2, 0.0)                                   # [64, TB]

    # fc3: [1,64] @ [64,TB] on the MXU -> lane-dense [1, TB]; scalar bias from SMEM.
    y = jnp.dot(w3_ref[...], h2,
                preferred_element_type=jnp.float32) + b3_ref[0, 0]
    o_ref[...] = y.astype(o_ref.dtype)                          # [1, TB]


def network_forward(x, params, *, block_cols=2048):
    """x: [batch, INPUT_SIZE] f32 -> [batch, OUTPUT_SIZE] f32 (PyTorch Network.forward math)."""
    w1, b1, w2, b2, w3, b3 = params
    batch = x.shape[0]

    # Lane-aligned, balanced batch tiles; keep the grid even when >1 so v7x's two
    # TensorCores both get work (harmless on single-TC v5e/v6e).
    b_ceil = _round_up(batch, 128)
    grid_n = pl.cdiv(b_ceil, block_cols)
    if grid_n > 1 and grid_n % 2 == 1:
        grid_n += 1
    tb = _round_up(pl.cdiv(b_ceil, grid_n), 128)
    b_pad = tb * grid_n

    xT = jnp.pad(x, ((0, b_pad - batch), (0, 0))).T             # [2, b_pad] feature-major

    flops = 2 * b_pad * (INPUT_SIZE * HIDDEN_SIZE
                         + HIDDEN_SIZE * HIDDEN_SIZE
                         + HIDDEN_SIZE * OUTPUT_SIZE)
    param_bytes = 4 * (HIDDEN_SIZE * INPUT_SIZE + HIDDEN_SIZE
                       + HIDDEN_SIZE * HIDDEN_SIZE + HIDDEN_SIZE
                       + HIDDEN_SIZE * OUTPUT_SIZE + OUTPUT_SIZE)
    bytes_accessed = 4 * b_pad * (INPUT_SIZE + OUTPUT_SIZE) + param_bytes

    out = pl.pallas_call(
        _mlp_kernel,
        out_shape=jax.ShapeDtypeStruct((1, b_pad), jnp.float32),
        grid=(grid_n,),
        in_specs=[
            pl.BlockSpec((INPUT_SIZE, tb), lambda i: (0, i)),             # xT  (tiled, lane-dense)
            pl.BlockSpec((HIDDEN_SIZE, INPUT_SIZE), lambda i: (0, 0)),    # w1  [64,2]  (VMEM-resident)
            pl.BlockSpec((HIDDEN_SIZE, 1), lambda i: (0, 0)),             # b1  [64,1]
            pl.BlockSpec((HIDDEN_SIZE, HIDDEN_SIZE), lambda i: (0, 0)),   # w2  [64,64]
            pl.BlockSpec((HIDDEN_SIZE, 1), lambda i: (0, 0)),             # b2  [64,1]
            pl.BlockSpec((OUTPUT_SIZE, HIDDEN_SIZE), lambda i: (0, 0)),   # w3  [1,64]
            pl.BlockSpec(memory_space=pltpu.MemorySpace.SMEM),            # b3  (1,1) scalar
        ],
        out_specs=pl.BlockSpec((1, tb), lambda i: (0, i)),                # yT  (lane-dense rows)
        compiler_params=pltpu.CompilerParams(
            dimension_semantics=("parallel",)),
        cost_estimate=pl.CostEstimate(
            flops=flops, transcendentals=0, bytes_accessed=bytes_accessed),
    )(xT, w1, b1, w2, b2, w3, b3)

    return out.reshape(b_pad, OUTPUT_SIZE)[:batch]


def init_params(key):
    """PyTorch nn.Linear-style init: U(-1/sqrt(fan_in), 1/sqrt(fan_in)).
    Weights kept in PyTorch [out, in] layout; biases as [out, 1] columns
    (feature-major); b3 is a (1, 1) scalar that lives in SMEM."""
    def linear(k, fan_in, fan_out):
        kw, kb = jax.random.split(k)
        bound = 1.0 / jnp.sqrt(fan_in)
        w = jax.random.uniform(kw, (fan_out, fan_in), jnp.float32, -bound, bound)
        b = jax.random.uniform(kb, (fan_out, 1), jnp.float32, -bound, bound)
        return w, b

    k1, k2, k3 = jax.random.split(key, 3)
    w1, b1 = linear(k1, INPUT_SIZE, HIDDEN_SIZE)
    w2, b2 = linear(k2, HIDDEN_SIZE, HIDDEN_SIZE)
    w3, b3 = linear(k3, HIDDEN_SIZE, OUTPUT_SIZE)   # w3 (1,64), b3 (1,1)
    return (w1, b1, w2, b2, w3, b3)


def _reference_forward(x, params):
    """Pure-f32 reference (matches the PyTorch module's math)."""
    w1, b1, w2, b2, w3, b3 = params
    hi = jax.lax.Precision.HIGHEST
    h1 = jnp.maximum(jnp.dot(x, w1.T, precision=hi) + b1.T, 0.0)
    h2 = jnp.maximum(jnp.dot(h1, w2.T, precision=hi) + b2.T, 0.0)
    return jnp.dot(h2, w3.T, precision=hi) + b3.T


if __name__ == "__main__":
    key = jax.random.PRNGKey(0)
    k_params, k_x_small, k_x_big = jax.random.split(key, 3)

    params = init_params(k_params)
    fwd = jax.jit(functools.partial(network_forward, block_cols=2048))

    # Small-batch check (single tile, grid=(1,)).
    batch = 8
    x = jax.random.normal(k_x_small, (batch, INPUT_SIZE), jnp.float32)
    out = jax.block_until_ready(fwd(x, params))
    assert out.shape == (batch, OUTPUT_SIZE), out.shape
    ref = _reference_forward(x, params)
    assert jnp.allclose(out, ref, atol=2e-3, rtol=2e-3), "mismatch vs f32 reference (small batch)"

    # Ragged larger batch exercising the batch grid (grid=(4,), tb=1152, pads 4500->4608).
    batch_big = 4500
    xb = jax.random.normal(k_x_big, (batch_big, INPUT_SIZE), jnp.float32)
    out_big = jax.block_until_ready(fwd(xb, params))
    assert out_big.shape == (batch_big, OUTPUT_SIZE), out_big.shape
    ref_big = _reference_forward(xb, params)
    assert jnp.allclose(out_big, ref_big, atol=2e-3, rtol=2e-3), "mismatch vs f32 reference (batched grid)"

    print("KERNEL_OK")
</pallas_src>

<mosaic_0001>
module attributes {stable_mosaic.version = 11 : i64} {
  func.func @_mlp_kernel(%arg0: i32, %arg1: memref<2x128xf32, #tpu.memory_space<vmem>>, %arg2: memref<64x2xf32, #tpu.memory_space<vmem>>, %arg3: memref<64x1xf32, #tpu.memory_space<vmem>>, %arg4: memref<64x64xf32, #tpu.memory_space<vmem>>, %arg5: memref<64x1xf32, #tpu.memory_space<vmem>>, %arg6: memref<1x64xf32, #tpu.memory_space<vmem>>, %arg7: memref<1x1xf32, #tpu.memory_space<smem>>, %arg8: memref<1x128xf32, #tpu.memory_space<vmem>>) attributes {dimension_semantics = [#tpu.dimension_semantics<parallel>], iteration_bounds = array<i64: 1>, scalar_prefetch = 0 : i64, scratch_operands = 0 : i64, tpu.core_type = #tpu.core_type<tc>, window_params = [{transform_indices = @transform_0, window_bounds = array<i64: 2, 128>}, {pipeline_mode = #tpu.pipeline_mode<synchronous>, transform_indices = @transform_1, window_bounds = array<i64: 64, 2>}, {pipeline_mode = #tpu.pipeline_mode<synchronous>, transform_indices = @transform_2, window_bounds = array<i64: 64, 1>}, {pipeline_mode = #tpu.pipeline_mode<synchronous>, transform_indices = @transform_3, window_bounds = array<i64: 64, 64>}, {pipeline_mode = #tpu.pipeline_mode<synchronous>, transform_indices = @transform_4, window_bounds = array<i64: 64, 1>}, {pipeline_mode = #tpu.pipeline_mode<synchronous>, transform_indices = @transform_5, window_bounds = array<i64: 1, 64>}, {transform_indices = @transform_6, window_bounds = array<i64: 1, 1>}, {transform_indices = @transform_7, window_bounds = array<i64: 1, 128>}]} {
    %c0 = arith.constant 0 : index
    %c0_0 = arith.constant 0 : index
    %0 = vector.load %arg1[%c0, %c0_0] : memref<2x128xf32, #tpu.memory_space<vmem>>, vector<2x128xf32>
    %c0_1 = arith.constant 0 : index
    %c0_2 = arith.constant 0 : index
    %1 = vector.load %arg2[%c0_1, %c0_2] : memref<64x2xf32, #tpu.memory_space<vmem>>, vector<64x1xf32>
    %2 = vector.extract_strided_slice %0 {offsets = [0, 0], sizes = [1, 128], strides = [1, 1]} : vector<2x128xf32> to vector<1x128xf32>
    %3 = vector.broadcast %1 : vector<64x1xf32> to vector<64x128xf32>
    %4 = vector.broadcast %2 : vector<1x128xf32> to vector<64x128xf32>
    %5 = arith.mulf %3, %4 : vector<64x128xf32>
    %c0_3 = arith.constant 0 : index
    %c1 = arith.constant 1 : index
    %6 = vector.load %arg2[%c0_3, %c1] : memref<64x2xf32, #tpu.memory_space<vmem>>, vector<64x1xf32>
    %7 = vector.extract_strided_slice %0 {offsets = [1, 0], sizes = [1, 128], strides = [1, 1]} : vector<2x128xf32> to vector<1x128xf32>
    %8 = vector.broadcast %6 : vector<64x1xf32> to vector<64x128xf32>
    %9 = vector.broadcast %7 : vector<1x128xf32> to vector<64x128xf32>
    %10 = arith.mulf %8, %9 : vector<64x128xf32>
    %11 = arith.addf %5, %10 : vector<64x128xf32>
    %c0_4 = arith.constant 0 : index
    %c0_5 = arith.constant 0 : index
    %12 = vector.load %arg3[%c0_4, %c0_5] : memref<64x1xf32, #tpu.memory_space<vmem>>, vector<64x1xf32>
    %13 = vector.broadcast %12 : vector<64x1xf32> to vector<64x128xf32>
    %14 = arith.addf %11, %13 : vector<64x128xf32>
    %cst = arith.constant 0.000000e+00 : f32
    %15 = vector.broadcast %cst : f32 to vector<64x128xf32>
    %16 = arith.maximumf %14, %15 : vector<64x128xf32>
    %c0_6 = arith.constant 0 : index
    %c0_7 = arith.constant 0 : index
    %17 = vector.load %arg4[%c0_6, %c0_7] : memref<64x64xf32, #tpu.memory_space<vmem>>, vector<64x64xf32>
    %cst_8 = arith.constant dense<0.000000e+00> : vector<64x128xf32>
    %18 = tpu.matmul %17, %16, %cst_8 {dimension_numbers = #tpu.dot_dimension_numbers<[1], [0], [0], [1], [0, 0, 1, 1], [], []>} : vector<64x64xf32>, vector<64x128xf32>, vector<64x128xf32> -> vector<64x128xf32>
    %c0_9 = arith.constant 0 : index
    %c0_10 = arith.constant 0 : index
    %19 = vector.load %arg5[%c0_9, %c0_10] : memref<64x1xf32, #tpu.memory_space<vmem>>, vector<64x1xf32>
    %20 = vector.broadcast %19 : vector<64x1xf32> to vector<64x128xf32>
    %21 = arith.addf %18, %20 : vector<64x128xf32>
    %cst_11 = arith.constant 0.000000e+00 : f32
    %22 = vector.broadcast %cst_11 : f32 to vector<64x128xf32>
    %23 = arith.maximumf %21, %22 : vector<64x128xf32>
    %c0_12 = arith.constant 0 : index
    %c0_13 = arith.constant 0 : index
    %24 = vector.load %arg6[%c0_12, %c0_13] : memref<1x64xf32, #tpu.memory_space<vmem>>, vector<1x64xf32>
    %cst_14 = arith.constant dense<0.000000e+00> : vector<1x128xf32>
    %25 = tpu.matmul %24, %23, %cst_14 {dimension_numbers = #tpu.dot_dimension_numbers<[1], [0], [0], [1], [0, 0, 1, 1], [], []>} : vector<1x64xf32>, vector<64x128xf32>, vector<1x128xf32> -> vector<1x128xf32>
    %c0_15 = arith.constant 0 : index
    %c0_16 = arith.constant 0 : index
    %26 = memref.load %arg7[%c0_15, %c0_16] : memref<1x1xf32, #tpu.memory_space<smem>>
    %27 = vector.broadcast %26 : f32 to vector<1x128xf32>
    %28 = arith.addf %25, %27 : vector<1x128xf32>
    %c0_17 = arith.constant 0 : index
    %c0_18 = arith.constant 0 : index
    %29 = vector.load %arg8[%c0_17, %c0_18] : memref<1x128xf32, #tpu.memory_space<vmem>>, vector<1x128xf32>
    tpu.vector_store %arg8[%c0_17, %c0_18], %28 {strides = array<i32>} : memref<1x128xf32, #tpu.memory_space<vmem>>, vector<1x128xf32>,
    return
  }
  func.func @transform_0(%arg0: i32) -> (i32, i32) {
    %c0_i32 = arith.constant 0 : i32
    %c0_i32_0 = arith.constant 0 : i32
    return %c0_i32, %arg0 : i32, i32
  }
  func.func @transform_1(%arg0: i32) -> (i32, i32) {
    %c0_i32 = arith.constant 0 : i32
    %c0_i32_0 = arith.constant 0 : i32
    %c0_i32_1 = arith.constant 0 : i32
    return %c0_i32, %c0_i32_0 : i32, i32
  }
  func.func @transform_2(%arg0: i32) -> (i32, i32) {
    %c0_i32 = arith.constant 0 : i32
    %c0_i32_0 = arith.constant 0 : i32
    %c0_i32_1 = arith.constant 0 : i32
    return %c0_i32, %c0_i32_0 : i32, i32
  }
  func.func @transform_3(%arg0: i32) -> (i32, i32) {
    %c0_i32 = arith.constant 0 : i32
    %c0_i32_0 = arith.constant 0 : i32
    %c0_i32_1 = arith.constant 0 : i32
    return %c0_i32, %c0_i32_0 : i32, i32
  }
  func.func @transform_4(%arg0: i32) -> (i32, i32) {
    %c0_i32 = arith.constant 0 : i32
    %c0_i32_0 = arith.constant 0 : i32
    %c0_i32_1 = arith.constant 0 : i32
    return %c0_i32, %c0_i32_0 : i32, i32
  }
  func.func @transform_5(%arg0: i32) -> (i32, i32) {
    %c0_i32 = arith.constant 0 : i32
    %c0_i32_0 = arith.constant 0 : i32
    %c0_i32_1 = arith.constant 0 : i32
    return %c0_i32, %c0_i32_0 : i32, i32
  }
  func.func @transform_6(%arg0: i32) -> (i32, i32) {
    %c0_i32 = arith.constant 0 : i32
    %c0_i32_0 = arith.constant 0 : i32
    %c0_i32_1 = arith.constant 0 : i32
    return %c0_i32, %c0_i32_0 : i32, i32
  }
  func.func @transform_7(%arg0: i32) -> (i32, i32) {
    %c0_i32 = arith.constant 0 : i32
    %c0_i32_0 = arith.constant 0 : i32
    return %c0_i32, %arg0 : i32, i32
  }
}

</mosaic_0001>

<bundles_post_ra>
// kernel: network_forward.1
= control target key start
LH: loop header
LB: loop body
LE: loop exit
PB: predicated region body
PF: predicated region fallthrough
CT: control target
= control target key end

     0   :  { %v603_v0 = vmov 1   ;;  %v604_v7 = vmov 0   ;;  %vm260_vm0 = vcmask 523264   ;;  %v76_v29 = vlaneseq  ;;  %s765_s1 = inlined_call_operand.vmem [shape: f32[64,2], index: 1, kind: input, shape index: {}]   ;;  %s766_s2 = inlined_call_operand.vmem [shape: f32[64,1], index: 2, kind: input, shape index: {}]   ;;  %s767_s4 = inlined_call_operand.vmem [shape: f32[64,1], index: 4, kind: input, shape index: {}]   ;;  %s768_s3 = inlined_call_operand.vmem [shape: f32[64,64], index: 3, kind: input, shape index: {}]   ;;  %s769_s0 = inlined_call_operand.vmem [shape: f32[2,128], index: 0, kind: input, shape index: {}]   ;;  %s770_s5 = inlined_call_operand.vmem [shape: f32[1,64], index: 5, kind: input, shape index: {}]   ;;  %s771_s6 = inlined_call_operand.<no memory space> [shape: f32[1,1], index: 6, kind: input, shape index: {}]   ;;  %s772_s7 = inlined_call_operand.vmem [shape: f32[1,128], index: 7, kind: output, shape index: {}]  }
   0x1   :  { %595 = vset.pattern.permute.xlu0 %v603_v0  ;;  %593 = vset.pattern.permute.xlu1 %v603_v0  ;;  %v30_v1 = vld [vmem:[%s765_s1 + $0x10] sm:$0xff]  ;;  %v28_v2 = vld [vmem:[%s765_s1] sm:$0xff]  ;;  %v29_v4 = vld [vmem:[%s765_s1 + $0x8] sm:$0xff]  ;;  %vm606_vm1 = vmmov 0  }
   0x2   :  { %97 = vperm.xlu0 %595, %v30_v1   ;;  %89 = vperm.xlu1 %593, %v28_v2   ;;  %v32_v3 = vld [vmem:[%s765_s1 + $0x20] sm:$0xff]  ;;  %v34_v5 = vld [vmem:[%s765_s1 + $0x30] sm:$0xff]  ;;  %v31_v6 = vld [vmem:[%s765_s1 + $0x18] sm:$0xff]  ;;  %v77_v32 = vshrl.u32 %v76_v29, 7 }
   0x3   :  { %v140_v8 = vld [vmem:[%s766_s2] sm:$0xff]  ;;  %v141_v9 = vld [vmem:[%s766_s2 + $0x8] sm:$0xff]  ;;  %v143_v11 = vld [vmem:[%s766_s2 + $0x18] sm:$0xff] }
   0x4   :  { %v33_v10 = vld [vmem:[%s765_s1 + $0x28] sm:$0xff]  ;;  %v212_v13 = vld [vmem:[%s767_s4] sm:$0xff]  ;;  %v142_v14 = vld [vmem:[%s766_s2 + $0x10] sm:$0xff]  ;;  %v122_v35 = vsub.s32 1, %v77_v32  ;;  %v78_v36 = vsub.s32 0, %v77_v32 }
   0x5   :  { %v145_v12 = vld [vmem:[%s766_s2 + $0x28] sm:$0xff]  ;;  %v214_v15 = vld [vmem:[%s767_s4 + $0x10] sm:$0xff]  ;;  %v216_v16 = vld [vmem:[%s767_s4 + $0x20] sm:$0xff] }
   0x6   :  { %105 = vperm.xlu0 %595, %v32_v3   ;;  %93 = vperm.xlu1 %593, %v29_v4   ;;  %v35_v17 = vld [vmem:[%s765_s1 + $0x38] sm:$0xff]  ;;  %v218_v18 = vld [vmem:[%s767_s4 + $0x30] sm:$0xff]  ;;  %v144_v19 = vld [vmem:[%s766_s2 + $0x20] sm:$0xff] }
   0x7   :  { %v146_v20 = vld [vmem:[%s766_s2 + $0x30] sm:$0xff]  ;;  %v147_v21 = vld [vmem:[%s766_s2 + $0x38] sm:$0xff]  ;;  %v213_v22 = vld [vmem:[%s767_s4 + $0x8] sm:$0xff] }
   0x8   :  { %v215_v23 = vld [vmem:[%s767_s4 + $0x18] sm:$0xff]  ;;  %v204_v24 = vld [vmem:[%s768_s3] sm:$0xff]  ;;  %v217_v25 = vld [vmem:[%s767_s4 + $0x28] sm:$0xff] }
   0x9   :  { %529 = vmatprep.mubr.msk.f32.mxu0 %vm260_vm0, %v204_v24  ;;  %v219_v26 = vld [vmem:[%s767_s4 + $0x38] sm:$0xff]  ;;  %v27_v37 = vld [vmem:[%s769_s0] sm:$0x3] }
   0xa   :  { %113 = vperm.xlu0 %595, %v34_v5   ;;  %594 = vset.pattern.permute.xlu1 %v604_v7  ;;  %v123_v40 = vrot.slane %v27_v37, %v122_v35  ;;  %v79_v41 = vrot.slane %v27_v37, %v78_v36 }
   0xb   :  { %53 = vperm.xlu1 %594, %v31_v6  }
   0xe   :  { %600 = vset.pattern.permute.xlu0 %v604_v7 }
   0xf   :  { %38 = vperm.xlu0 %600, %v28_v2   ;;  %596 = vset.pattern.permute.xlu1 %v603_v0 }
  0x10   :  { %101 = vperm.xlu1 %596, %v31_v6  }
  0x13   :  { %43 = vperm.xlu0 %600, %v29_v4  }
  0x14   :  { %597 = vset.pattern.permute.xlu1 %v604_v7 }
  0x15   :  { %150 = vperm.xlu1 %597, %v140_v8  }
  0x17   :  { %48 = vperm.xlu0 %600, %v30_v1  }
  0x19   :  { %58 = vperm.xlu1 %597, %v32_v3  }
  0x1b   :  { %155 = vperm.xlu0 %600, %v141_v9  }
  0x1d   :  { %63 = vperm.xlu1 %597, %v33_v10  }
  0x1f   :  { %165 = vperm.xlu0 %600, %v143_v11  }
  0x21   :  { %598 = vset.pattern.permute.xlu1 %v603_v0 }
  0x22   :  { %109 = vperm.xlu1 %598, %v33_v10  }
  0x23   :  { %175 = vperm.xlu0 %600, %v145_v12  }
  0x26   :  { %599 = vset.pattern.permute.xlu1 %v604_v7 }
  0x27   :  { %222 = vperm.xlu0 %600, %v212_v13   ;;  %160 = vperm.xlu1 %599, %v142_v14  }
  0x2b   :  { %232 = vperm.xlu0 %600, %v214_v15   ;;  %68 = vperm.xlu1 %599, %v34_v5  }
  0x2f   :  { %242 = vperm.xlu0 %600, %v216_v16   ;;  %73 = vperm.xlu1 %599, %v35_v17  }
  0x33   :  { %252 = vperm.xlu0 %600, %v218_v18   ;;  %601 = vset.pattern.permute.xlu1 %v603_v0 }
  0x34   :  { %117 = vperm.xlu1 %601, %v35_v17  }
  0x38   :  { %602 = vset.pattern.permute.xlu1 %v604_v7 }
  0x39   :  { %170 = vperm.xlu1 %602, %v144_v19  }
  0x3d   :  { %180 = vperm.xlu1 %602, %v146_v20  }
  0x41   :  { %185 = vperm.xlu1 %602, %v147_v21  }
  0x45   :  { %227 = vperm.xlu1 %602, %v213_v22  }
  0x49   :  { %237 = vperm.xlu1 %602, %v215_v23  }
  0x4d   :  { %247 = vperm.xlu1 %602, %v217_v25  }
  0x51   :  { %257 = vperm.xlu1 %602, %v219_v26  }
  0x81   :  { %v90_v27 = vpop.permute.xlu1 %89  ;;  %v98_v28 = vpop.permute.xlu0 %97 }
  0x82   :  { %v124_v45 = vmul.f32 %v123_v40, %v90_v27  ;;  %v126_v60 = vmul.f32 %v123_v40, %v98_v28 }
  0x85   :  { %v94_v30 = vpop.permute.xlu1 %93  ;;  %v106_v31 = vpop.permute.xlu0 %105 }
  0x86   :  { %v125_v48 = vmul.f32 %v123_v40, %v94_v30  ;;  %v128_v13 = vmul.f32 %v123_v40, %v106_v31 }
  0x89   :  { %v114_v33 = vpop.permute.xlu0 %113 }
  0x8a   :  { %v54_v34 = vpop.permute.xlu1 %53  ;;  %v130_v23 = vmul.f32 %v123_v40, %v114_v33  ;;  %v205_v33 = vld [vmem:[%s768_s3 + $0x8] sm:$0xff] }
  0x8b   :  { %v83_v61 = vmul.f32 %v79_v41, %v54_v34 }
  0x8e   :  { %v39_v38 = vpop.permute.xlu0 %38 }
  0x8f   :  { %v102_v39 = vpop.permute.xlu1 %101  ;;  %v80_v43 = vmul.f32 %v79_v41, %v39_v38 }
  0x90   :  { %v127_v58 = vmul.f32 %v123_v40, %v102_v39  ;;  %v206_v39 = vld [vmem:[%s768_s3 + $0x10] sm:$0xff] }
  0x91   :  { %v132_v49 = vadd.f32 %v124_v45, %v80_v43  ;;  %v210_v43 = vld [vmem:[%s768_s3 + $0x30] sm:$0xff]  ;;  %v605_v45 = vmov 0.0|0.0  }
  0x92   :  { %v44_v42 = vpop.permute.xlu0 %43  ;;  %v135_v1 = vadd.f32 %v127_v58, %v83_v61  ;;  %576 = vmatprep.subr.bf16.mxu1 %v605_v45 }
  0x93   :  { %v81_v46 = vmul.f32 %v79_v41, %v44_v42  ;;  %v209_v42 = vld [vmem:[%s768_s3 + $0x28] sm:$0xff] }
  0x94   :  { %v151_v44 = vpop.permute.xlu1 %150 }
  0x95   :  { %v188_v51 = vadd.f32 %v151_v44, %v132_v49  ;;  %v133_v52 = vadd.f32 %v125_v48, %v81_v46  ;;  %v211_v44 = vld [vmem:[%s768_s3 + $0x38] sm:$0xff]  ;;  %v607_v46 = vmov 0.0  }
  0x96   :  { %v49_v47 = vpop.permute.xlu0 %48  ;;  %557 = vmatprep.mubr.msk.f32.mxu1 %vm606_vm1, %v607_v46 }
  0x97   :  { %v196_v56 = vmax.f32 %v188_v51, 0.0  ;;  %v82_v62 = vmul.f32 %v79_v41, %v49_v47 }
  0x98   :  { %v59_v50 = vpop.permute.xlu1 %58 }
  0x99   :  { %v134_v3 = vadd.f32 %v126_v60, %v82_v62  ;;  %v84_v14 = vmul.f32 %v79_v41, %v59_v50 }
  0x9a   :  { %v156_v53 = vpop.permute.xlu0 %155 }
  0x9b   :  { %v189_v54 = vadd.f32 %v156_v53, %v133_v52  ;;  %v136_v19 = vadd.f32 %v128_v13, %v84_v14 }
  0x9c   :  { %v64_v55 = vpop.permute.xlu1 %63 }
  0x9d   :  { %v197_v57 = vmax.f32 %v189_v54, 0.0  ;;  %v85_v12 = vmul.f32 %v79_v41, %v64_v55 }
  0x9e   :  { %v166_v0 = vpop.permute.xlu0 %165 }
  0x9f   :  { %v560_v59 = vpack.c.bf16 %v197_v57, %v196_v56  ;;  %v191_v2 = vadd.f32 %v166_v0, %v135_v1 }
  0xa1   :  { %v110_v63 = vpop.permute.xlu1 %109  ;;  %561 = vmatprep.subr.bf16.mxu0 %v560_v59  ;;  %v199_v6 = vmax.f32 %v191_v2, 0.0 }
  0xa2   :  { %563 = vmatpush3.bf16.msra.mxu0 %v560_v59  ;;  %v129_v11 = vmul.f32 %v123_v40, %v110_v63  ;;  %v176_v17 = vpop.permute.xlu0 %175 }
  0xa4   :  { %v137_v15 = vadd.f32 %v129_v11, %v85_v12 }
  0xa6   :  { %v161_v4 = vpop.permute.xlu1 %160  ;;  %v193_v18 = vadd.f32 %v176_v17, %v137_v15  ;;  %v223_v48 = vpop.permute.xlu0 %222 }
  0xa7   :  { %v190_v5 = vadd.f32 %v161_v4, %v134_v3 }
  0xa8   :  { %v201_v24 = vmax.f32 %v193_v18, 0.0 }
  0xa9   :  { %v198_v7 = vmax.f32 %v190_v5, 0.0 }
  0xaa   :  { %v69_v8 = vpop.permute.xlu1 %68  ;;  %v233_v51 = vpop.permute.xlu0 %232 }
  0xab   :  { %v564_v9 = vpack.c.bf16 %v199_v6, %v198_v7  ;;  %v86_v21 = vmul.f32 %v79_v41, %v69_v8 }
  0xad   :  { %565 = vmatprep.subr.bf16.mxu0 %v564_v9  ;;  %v138_v30 = vadd.f32 %v130_v23, %v86_v21 }
  0xae   :  { %v74_v10 = vpop.permute.xlu1 %73  ;;  %567 = vmatpush3.bf16.msra.mxu0 %v564_v9  ;;  %v243_v63 = vpop.permute.xlu0 %242 }
  0xaf   :  { %v87_v28 = vmul.f32 %v79_v41, %v74_v10  ;;  %v208_v41 = vld [vmem:[%s768_s3 + $0x20] sm:$0xff] }
  0xb2   :  { %v253_v11 = vpop.permute.xlu0 %252 }
  0xb3   :  { %v118_v16 = vpop.permute.xlu1 %117 }
  0xb4   :  { %v131_v25 = vmul.f32 %v123_v40, %v118_v16  ;;  %v207_v40 = vld [vmem:[%s768_s3 + $0x18] sm:$0xff] }
  0xb6   :  { %v139_v31 = vadd.f32 %v131_v25, %v87_v28 }
  0xb8   :  { %v171_v20 = vpop.permute.xlu1 %170 }
  0xb9   :  { %v192_v22 = vadd.f32 %v171_v20, %v136_v19  ;;  %v398_v19 = vld [vmem:[%s770_s5] sm:$0x1]  ;;  %v400_v20 = vstv %s771_s6 }
  0xbb   :  { %v200_v26 = vmax.f32 %v192_v22, 0.0 }
  0xbc   :  { %v181_v27 = vpop.permute.xlu1 %180 }
  0xbd   :  { %v568_v29 = vpack.c.bf16 %v201_v24, %v200_v26  ;;  %v194_v32 = vadd.f32 %v181_v27, %v138_v30 }
  0xbf   :  { %569 = vmatprep.subr.bf16.mxu0 %v568_v29  ;;  %v202_v36 = vmax.f32 %v194_v32, 0.0 }
  0xc0   :  { %v186_v34 = vpop.permute.xlu1 %185  ;;  %571 = vmatpush3.bf16.msra.mxu0 %v568_v29 }
  0xc1   :  { %v195_v35 = vadd.f32 %v186_v34, %v139_v31 }
  0xc3   :  { %v203_v37 = vmax.f32 %v195_v35, 0.0 }
  0xc4   :  { %v228_v47 = vpop.permute.xlu1 %227 }
  0xc5   :  { %v572_v38 = vpack.c.bf16 %v203_v37, %v202_v36 }
  0xc7   :  { %573 = vmatprep.subr.bf16.mxu0 %v572_v38 }
  0xc8   :  { %575 = vmatpush3.bf16.msra.mxu0 %v572_v38  ;;  %v238_v49 = vpop.permute.xlu1 %237 }
  0xcb   :  { %530 = vmatmul.mubr.msk.f32.vlgmr.msra.gmra.mrb[0].mxu0 %vm260_vm0, %v205_v33 }
  0xcc   :  { %532 = vmatprep.mubr.msk.f32.mxu0 %vm260_vm0, %v206_v39  ;;  %v248_v60 = vpop.permute.xlu1 %247 }
  0xcf   :  { %533 = vmatmul.mubr.msk.f32.gmra.mrb[2].mxu0 %vm260_vm0, %v207_v40 }
  0xd0   :  { %535 = vmatprep.mubr.msk.f32.mxu0 %vm260_vm0, %v208_v41  ;;  %v258_v8 = vpop.permute.xlu1 %257 }
  0xd3   :  { %536 = vmatmul.mubr.msk.f32.gmra.mrb[4].mxu0 %vm260_vm0, %v209_v42 }
  0xd4   :  { %538 = vmatprep.mubr.msk.f32.mxu0 %vm260_vm0, %v210_v43 }
  0xd7   :  { %539 = vmatmul.mubr.msk.f32.gmra.mrb[6].mxu0 %vm260_vm0, %v211_v44 }
 0x19e   :  { %v531_v50 = vpop.f32.mrb[0].mxu0 }
 0x19f   :  { %v357_v52 = vadd.f32 %v531_v50, %v228_v47  ;;  %v351_v53 = vpop.f32.mrb[1].mxu0 }
 0x1a0   :  { %v352_v54 = vadd.f32 %v351_v53, %v223_v48 }
 0x1a1   :  { %v391_v55 = vmax.f32 %v357_v52, 0.0 }
 0x1a2   :  { %v390_v56 = vmax.f32 %v352_v54, 0.0  ;;  %v534_v57 = vpop.f32.mrb[2].mxu0 }
 0x1a3   :  { %v367_v58 = vadd.f32 %v534_v57, %v238_v49  ;;  %v361_v59 = vpop.f32.mrb[3].mxu0 }
 0x1a4   :  { %v362_v61 = vadd.f32 %v361_v59, %v233_v51  ;;  %v577_v62 = vpack.c.bf16 %v391_v55, %v390_v56 }
 0x1a5   :  { %v393_v0 = vmax.f32 %v367_v58, 0.0 }
 0x1a6   :  { %v392_v1 = vmax.f32 %v362_v61, 0.0  ;;  %v537_v2 = vpop.f32.mrb[4].mxu0  ;;  %578 = vmatpush3.bf16.msra.mxu1 %v577_v62 }
 0x1a7   :  { %v377_v3 = vadd.f32 %v537_v2, %v248_v60  ;;  %v371_v4 = vpop.f32.mrb[5].mxu0  ;;  %579 = vmatprep.subr.bf16.mxu1 %v605_v45 }
 0x1a8   :  { %v580_v5 = vpack.c.bf16 %v393_v0, %v392_v1  ;;  %v372_v6 = vadd.f32 %v371_v4, %v243_v63 }
 0x1a9   :  { %v395_v7 = vmax.f32 %v377_v3, 0.0 }
 0x1aa   :  { %v394_v9 = vmax.f32 %v372_v6, 0.0  ;;  %v540_v10 = vpop.f32.mrb[6].mxu0  ;;  %581 = vmatpush3.bf16.msra.mxu1 %v580_v5 }
 0x1ab   :  { %v387_v12 = vadd.f32 %v540_v10, %v258_v8  ;;  %v381_v13 = vpop.f32.mrb[7].mxu0  ;;  %582 = vmatprep.subr.bf16.mxu1 %v605_v45 }
 0x1ac   :  { %v583_v14 = vpack.c.bf16 %v395_v7, %v394_v9  ;;  %v382_v15 = vadd.f32 %v381_v13, %v253_v11 }
 0x1ad   :  { %v397_v16 = vmax.f32 %v387_v12, 0.0 }
 0x1ae   :  { %v396_v17 = vmax.f32 %v382_v15, 0.0  ;;  %584 = vmatpush3.bf16.msra.mxu1 %v583_v14 }
 0x1af   :  { %585 = vmatprep.subr.bf16.mxu1 %v605_v45 }
 0x1b0   :  { %v586_v18 = vpack.c.bf16 %v397_v16, %v396_v17 }
 0x1b2   :  { %587 = vmatpush3.bf16.msra.mxu1 %v586_v18 }
 0x1b5   :  { %558 = vmatmul.mubr.msk.f32.vlgmr.msra.gmra.mrb[0].mxu1 %vm260_vm0, %v398_v19 }
 0x288   :  { %v470_v21 = vpop.f32.mrb[0].mxu1 }
 0x289   :  { %v471_v22 = vadd.f32 %v470_v21, %v400_v20  ;;  %v559_v23 = vpop.f32.mrb[1].mxu1 }
 0x28b   :  { %474 = vst [vmem:[%s772_s7] sm:$0x1] %v471_v22 }

</bundles_post_ra>
